<compile_context>
chip_gen: v5e
topology: v5e:2x2
jax: 0.10.0
libtpu: 0.0.40
codegen_flags: <defaults>
</compile_context>

<pallas_src>
import jax
import jax.numpy as jnp
from jax import lax
from jax.experimental import pallas as pl
from jax.experimental.pallas import tpu as pltpu

INPUT_SIZE = 39
HIDDEN_SIZE = 64
K_PAD = 64          # feature dim zero-padded to a lane-friendly size
BN_EPS = 1e-5
DROPOUT_P = 0.5


def _dropout_keep_mask(global_row, col, seed_u32):
    """Stateless counter-based hash -> keep mask with P(keep) = 0.5.

    Plain 32-bit integer ops only, so it lowers both under Mosaic and the
    Pallas CPU interpreter (pltpu.prng_* does not).  The mask depends only on
    (global_row, col, seed), so it is identical across batch tilings and across
    the two kernel phases.  Keep bit is the (high-quality) top bit.
    """
    g = (global_row * HIDDEN_SIZE + col).astype(jnp.uint32)
    z = g ^ (seed_u32 * jnp.uint32(0x9E3779B9))
    z = z * jnp.uint32(0x85EBCA6B)
    z = z ^ (z >> 13)
    z = z * jnp.uint32(0xC2B2AE35)
    z = z ^ (z >> 16)
    return (z >> 31) == 0


def enhanced_model_kernel(scal_ref, x_ref, w1t_ref, pvec_ref, out_ref,
                          sum_ref, sumsq_ref):
    phase = pl.program_id(0)        # 0: accumulate BN stats, 1: apply + fc2
    tile = pl.program_id(1)         # batch-tile index
    tb = x_ref.shape[0]
    h_dim = HIDDEN_SIZE

    seed_u32 = scal_ref[0].astype(jnp.uint32)
    n_valid = scal_ref[1]           # true (un-padded) batch size

    # ---- fc1 + ReLU (recomputed in both phases: cheaper than spilling h) ----
    h = jnp.dot(x_ref[...], w1t_ref[...], preferred_element_type=jnp.float32)
    h = jnp.maximum(h + pvec_ref[0:1, :], 0.0)                       # (tb, 64)

    # ---- dropout p=0.5, inverted scaling, deterministic stateless hash ----
    row_l = lax.broadcasted_iota(jnp.int32, (tb, h_dim), 0)
    col = lax.broadcasted_iota(jnp.int32, (tb, h_dim), 1)
    grow = tile * tb + row_l                                         # global row
    keep = _dropout_keep_mask(grow, col, seed_u32)
    h = jnp.where(keep, h * (1.0 / (1.0 - DROPOUT_P)), 0.0)

    # rows >= n_valid are batch padding; exclude them from the statistics
    valid = (tile * tb + lax.broadcasted_iota(jnp.int32, (tb, 1), 0)) < n_valid

    @pl.when(jnp.logical_and(phase == 0, tile == 0))
    def _init():
        sum_ref[...] = jnp.zeros_like(sum_ref)
        sumsq_ref[...] = jnp.zeros_like(sumsq_ref)

    @pl.when(phase == 0)
    def _accumulate():
        hv = jnp.where(valid, h, 0.0)
        sum_ref[...] += jnp.sum(hv, axis=0, keepdims=True)           # (1, 64)
        sumsq_ref[...] += jnp.sum(hv * hv, axis=0, keepdims=True)    # (1, 64)
        out_ref[...] = jnp.zeros_like(out_ref)   # deterministic placeholder

    @pl.when(phase == 1)
    def _normalize_and_project():
        inv_n = 1.0 / n_valid.astype(jnp.float32)
        mean = sum_ref[...] * inv_n
        var = sumsq_ref[...] * inv_n - mean * mean                   # biased var
        gamma = pvec_ref[1:2, :]
        beta = pvec_ref[2:3, :]
        w2r = pvec_ref[3:4, :]
        b2 = pvec_ref[4:5, 0:1]                                      # (1, 1)
        # Fold BN affine into fc2:  y = h @ (w2*s)^T + ((beta - mean*s)·w2 + b2)
        s = gamma * lax.rsqrt(var + BN_EPS)                          # (1, 64)
        w2s = w2r * s
        const = jnp.sum((beta - mean * s) * w2r, axis=-1, keepdims=True) + b2
        # fc2 with N=1 as VPU multiply + lane reduce (keeps it off the MXU)
        out_ref[...] = jnp.sum(h * w2s, axis=-1, keepdims=True) + const


def _round_up(a, m):
    return ((a + m - 1) // m) * m


def enhanced_model_forward(x, params, seed, *, tile_b=512):
    """x: (B, 39) float32 -> (B, 1) float32 (training-mode forward)."""
    B, F = x.shape
    assert F == INPUT_SIZE
    H = HIDDEN_SIZE

    TB = _round_up(min(tile_b, _round_up(B, 8)), 8)   # (8,)-aligned batch tile
    B_pad = _round_up(B, TB)
    nt = B_pad // TB

    # Zero-pad features 39 -> 64 and batch B -> B_pad (pad rows masked out of
    # the BN statistics inside the kernel, sliced off the output here).
    x_pad = jnp.zeros((B_pad, K_PAD), jnp.float32).at[:B, :F].set(x)
    w1t_pad = jnp.zeros((K_PAD, H), jnp.float32).at[:F, :].set(params["w1"].T)

    # Pack all the small per-feature parameters into ONE (8, 64) VMEM block:
    # rows: 0=b1, 1=gamma, 2=beta, 3=w2 row, 4=b2 (broadcast), 5..7 unused.
    pvec = jnp.zeros((8, H), jnp.float32)
    pvec = pvec.at[0].set(params["b1"])
    pvec = pvec.at[1].set(params["gamma"])
    pvec = pvec.at[2].set(params["beta"])
    pvec = pvec.at[3].set(params["w2"].reshape(H))
    pvec = pvec.at[4].set(params["b2"][0])

    scalars = jnp.asarray([int(seed), B], dtype=jnp.int32)

    out_pad = pl.pallas_call(
        enhanced_model_kernel,
        out_shape=jax.ShapeDtypeStruct((B_pad, 1), jnp.float32),
        grid=(2, nt),   # phase-major: all stats tiles first, then apply tiles
        in_specs=[
            pl.BlockSpec((2,), lambda p, i: (0,),
                         memory_space=pltpu.MemorySpace.SMEM),  # [seed, B]
            pl.BlockSpec((TB, K_PAD), lambda p, i: (i, 0)),     # x: tiled
            pl.BlockSpec((K_PAD, H), lambda p, i: (0, 0)),      # w1^T: resident
            pl.BlockSpec((8, H), lambda p, i: (0, 0)),          # packed params
        ],
        out_specs=pl.BlockSpec((TB, 1), lambda p, i: (i, 0)),
        scratch_shapes=[pltpu.VMEM((1, H), jnp.float32),        # BN sum
                        pltpu.VMEM((1, H), jnp.float32)],       # BN sum-of-sq
        compiler_params=pltpu.CompilerParams(
            # Both axes 'arbitrary': the BN-stats accumulators live in per-core
            # VMEM scratch, so batch tiles must run sequentially after the
            # stats phase.
            # TODO(synk): splitting batch tiles across v7x's 2 TCs would need a
            # cross-core partial-sum combine before phase 1.
            dimension_semantics=("arbitrary", "arbitrary"),
        ),
    )(scalars, x_pad, w1t_pad, pvec)

    return out_pad[:B]


def reference_forward(x, params, seed):
    """Pure-JAX mirror of the kernel (same deterministic dropout mask)."""
    B = x.shape[0]
    h = jnp.maximum(x @ params["w1"].T + params["b1"], 0.0)
    row = jnp.arange(B, dtype=jnp.int32)[:, None]
    col = jnp.arange(HIDDEN_SIZE, dtype=jnp.int32)[None, :]
    keep = _dropout_keep_mask(row, col, jnp.uint32(seed))
    h = jnp.where(keep, h * (1.0 / (1.0 - DROPOUT_P)), 0.0)
    mean = jnp.mean(h, axis=0, keepdims=True)
    var = jnp.mean((h - mean) ** 2, axis=0, keepdims=True)
    h = (h - mean) * jax.lax.rsqrt(var + BN_EPS) * params["gamma"] + params["beta"]
    return h @ params["w2"].T + params["b2"]


def init_params(key):
    """Deterministic init mirroring nn.Linear / nn.BatchNorm1d shapes."""
    k1, k2, k3, k4 = jax.random.split(key, 4)
    bound1 = 1.0 / jnp.sqrt(INPUT_SIZE)
    bound2 = 1.0 / jnp.sqrt(HIDDEN_SIZE)
    return {
        "w1": jax.random.uniform(k1, (HIDDEN_SIZE, INPUT_SIZE), jnp.float32,
                                 -bound1, bound1),
        "b1": jax.random.uniform(k2, (HIDDEN_SIZE,), jnp.float32,
                                 -bound1, bound1),
        "gamma": jnp.ones((HIDDEN_SIZE,), jnp.float32),
        "beta": jnp.zeros((HIDDEN_SIZE,), jnp.float32),
        "w2": jax.random.uniform(k3, (1, HIDDEN_SIZE), jnp.float32,
                                 -bound2, bound2),
        "b2": jax.random.uniform(k4, (1,), jnp.float32, -bound2, bound2),
    }


if __name__ == "__main__":
    key = jax.random.PRNGKey(0)
    pkey, xkey = jax.random.split(key)
    params = init_params(pkey)

    # Small run: single batch tile (grid = (2, 1)).
    x_small = jax.random.normal(xkey, (8, INPUT_SIZE), dtype=jnp.float32)
    out_small = jax.block_until_ready(
        enhanced_model_forward(x_small, params, seed=1234))
    ref_small = reference_forward(x_small, params, seed=1234)
    assert out_small.shape == (8, 1) and out_small.dtype == jnp.float32

    # Larger ragged run: exercises tiled two-phase BN and a padded last tile.
    x_big = jax.random.normal(xkey, (200, INPUT_SIZE), dtype=jnp.float32)
    out_big = jax.block_until_ready(
        enhanced_model_forward(x_big, params, seed=7, tile_b=64))
    ref_big = reference_forward(x_big, params, seed=7)
    assert out_big.shape == (200, 1)

    assert bool(jnp.allclose(out_small, ref_small, rtol=2e-3, atol=2e-3)), \
        float(jnp.max(jnp.abs(out_small - ref_small)))
    assert bool(jnp.allclose(out_big, ref_big, rtol=2e-3, atol=2e-3)), \
        float(jnp.max(jnp.abs(out_big - ref_big)))
    print("KERNEL_OK")
</pallas_src>

<mosaic_0001>
module attributes {stable_mosaic.version = 11 : i64} {
  func.func @enhanced_model_kernel(%arg0: i32, %arg1: i32, %arg2: memref<2xi32, #tpu.memory_space<smem>>, %arg3: memref<8x64xf32, #tpu.memory_space<vmem>>, %arg4: memref<64x64xf32, #tpu.memory_space<vmem>>, %arg5: memref<8x64xf32, #tpu.memory_space<vmem>>, %arg6: memref<8x1xf32, #tpu.memory_space<vmem>>, %arg7: memref<1x64xf32, #tpu.memory_space<vmem>>, %arg8: memref<1x64xf32, #tpu.memory_space<vmem>>) attributes {dimension_semantics = [#tpu.dimension_semantics<arbitrary>, #tpu.dimension_semantics<arbitrary>], iteration_bounds = array<i64: 2, 1>, scalar_prefetch = 0 : i64, scratch_operands = 2 : i64, tpu.core_type = #tpu.core_type<tc>, window_params = [{transform_indices = @transform_0, window_bounds = array<i64: 2>}, {transform_indices = @transform_1, window_bounds = array<i64: 8, 64>}, {pipeline_mode = #tpu.pipeline_mode<synchronous>, transform_indices = @transform_2, window_bounds = array<i64: 64, 64>}, {pipeline_mode = #tpu.pipeline_mode<synchronous>, transform_indices = @transform_3, window_bounds = array<i64: 8, 64>}, {transform_indices = @transform_4, window_bounds = array<i64: 8, 1>}]} {
    %c0 = arith.constant 0 : index
    %0 = memref.load %arg2[%c0] : memref<2xi32, #tpu.memory_space<smem>>
    %c1 = arith.constant 1 : index
    %1 = memref.load %arg2[%c1] : memref<2xi32, #tpu.memory_space<smem>>
    %c0_0 = arith.constant 0 : index
    %c0_1 = arith.constant 0 : index
    %2 = vector.load %arg3[%c0_0, %c0_1] : memref<8x64xf32, #tpu.memory_space<vmem>>, vector<8x64xf32>
    %c0_2 = arith.constant 0 : index
    %c0_3 = arith.constant 0 : index
    %3 = vector.load %arg4[%c0_2, %c0_3] : memref<64x64xf32, #tpu.memory_space<vmem>>, vector<64x64xf32>
    %cst = arith.constant dense<0.000000e+00> : vector<8x64xf32>
    %4 = tpu.matmul %2, %3, %cst {dimension_numbers = #tpu.dot_dimension_numbers<[1], [0], [0], [1], [0, 0, 1, 1], [], []>} : vector<8x64xf32>, vector<64x64xf32>, vector<8x64xf32> -> vector<8x64xf32>
    %c0_4 = arith.constant 0 : index
    %c0_5 = arith.constant 0 : index
    %5 = vector.load %arg5[%c0_4, %c0_5] : memref<8x64xf32, #tpu.memory_space<vmem>>, vector<1x64xf32>
    %6 = vector.broadcast %5 : vector<1x64xf32> to vector<8x64xf32>
    %7 = arith.addf %4, %6 : vector<8x64xf32>
    %cst_6 = arith.constant 0.000000e+00 : f32
    %8 = vector.broadcast %cst_6 : f32 to vector<8x64xf32>
    %9 = arith.maximumf %7, %8 : vector<8x64xf32>
    %10 = tpu.iota {dimensions = array<i32: 0>} : vector<8x64xi32>
    %11 = tpu.iota {dimensions = array<i32: 1>} : vector<8x64xi32>
    %c8_i32 = arith.constant 8 : i32
    %12 = arith.muli %arg1, %c8_i32 : i32
    %13 = vector.broadcast %12 : i32 to vector<8x64xi32>
    %14 = arith.addi %13, %10 : vector<8x64xi32>
    %c64_i32 = arith.constant 64 : i32
    %15 = vector.broadcast %c64_i32 : i32 to vector<8x64xi32>
    %16 = arith.muli %14, %15 : vector<8x64xi32>
    %17 = arith.addi %16, %11 : vector<8x64xi32>
    %c-1640531527_i32 = arith.constant -1640531527 : i32
    %18 = arith.muli %0, %c-1640531527_i32 : i32
    %19 = vector.broadcast %18 : i32 to vector<8x64xi32>
    %20 = arith.xori %17, %19 : vector<8x64xi32>
    %c-2048144789_i32 = arith.constant -2048144789 : i32
    %21 = vector.broadcast %c-2048144789_i32 : i32 to vector<8x64xi32>
    %22 = arith.muli %20, %21 : vector<8x64xi32>
    %c13_i32 = arith.constant 13 : i32
    %23 = vector.broadcast %c13_i32 : i32 to vector<8x64xi32>
    %24 = arith.shrui %22, %23 : vector<8x64xi32>
    %25 = arith.xori %22, %24 : vector<8x64xi32>
    %c-1028477387_i32 = arith.constant -1028477387 : i32
    %26 = vector.broadcast %c-1028477387_i32 : i32 to vector<8x64xi32>
    %27 = arith.muli %25, %26 : vector<8x64xi32>
    %c16_i32 = arith.constant 16 : i32
    %28 = vector.broadcast %c16_i32 : i32 to vector<8x64xi32>
    %29 = arith.shrui %27, %28 : vector<8x64xi32>
    %30 = arith.xori %27, %29 : vector<8x64xi32>
    %c31_i32 = arith.constant 31 : i32
    %31 = vector.broadcast %c31_i32 : i32 to vector<8x64xi32>
    %32 = arith.shrui %30, %31 : vector<8x64xi32>
    %c0_i32 = arith.constant 0 : i32
    %33 = vector.broadcast %c0_i32 : i32 to vector<8x64xi32>
    %34 = arith.cmpi eq, %32, %33 : vector<8x64xi32>
    %cst_7 = arith.constant 2.000000e+00 : f32
    %35 = vector.broadcast %cst_7 : f32 to vector<8x64xf32>
    %36 = arith.mulf %9, %35 : vector<8x64xf32>
    %cst_8 = arith.constant 0.000000e+00 : f32
    %37 = vector.broadcast %cst_8 : f32 to vector<8x64xf32>
    %38 = arith.select %34, %36, %37 : vector<8x64xi1>, vector<8x64xf32>
    %c8_i32_9 = arith.constant 8 : i32
    %39 = arith.muli %arg1, %c8_i32_9 : i32
    %40 = tpu.iota {dimensions = array<i32: 0>} : vector<8x1xi32>
    %41 = vector.broadcast %39 : i32 to vector<8x1xi32>
    %42 = arith.addi %41, %40 : vector<8x1xi32>
    %43 = vector.broadcast %1 : i32 to vector<8x1xi32>
    %44 = arith.cmpi slt, %42, %43 : vector<8x1xi32>
    %c0_i32_10 = arith.constant 0 : i32
    %45 = arith.cmpi eq, %arg0, %c0_i32_10 : i32
    %c0_i32_11 = arith.constant 0 : i32
    %46 = arith.cmpi eq, %arg1, %c0_i32_11 : i32
    %47 = arith.andi %45, %46 : i1
    %48 = arith.extui %47 : i1 to i32
    %c0_i32_12 = arith.constant 0 : i32
    %49 = arith.cmpi ne, %48, %c0_i32_12 : i32
    scf.if %49 {
      %cst_16 = arith.constant 0.000000e+00 : f32
      %56 = vector.broadcast %cst_16 : f32 to vector<1x64xf32>
      %c0_17 = arith.constant 0 : index
      %c0_18 = arith.constant 0 : index
      %57 = vector.load %arg7[%c0_17, %c0_18] : memref<1x64xf32, #tpu.memory_space<vmem>>, vector<1x64xf32>
      tpu.vector_store %arg7[%c0_17, %c0_18], %56 {strides = array<i32>} : memref<1x64xf32, #tpu.memory_space<vmem>>, vector<1x64xf32>,
      %cst_19 = arith.constant 0.000000e+00 : f32
      %58 = vector.broadcast %cst_19 : f32 to vector<1x64xf32>
      %c0_20 = arith.constant 0 : index
      %c0_21 = arith.constant 0 : index
      %59 = vector.load %arg8[%c0_20, %c0_21] : memref<1x64xf32, #tpu.memory_space<vmem>>, vector<1x64xf32>
      tpu.vector_store %arg8[%c0_20, %c0_21], %58 {strides = array<i32>} : memref<1x64xf32, #tpu.memory_space<vmem>>, vector<1x64xf32>,
    } else {
    }
    %c0_i32_13 = arith.constant 0 : i32
    %50 = arith.cmpi eq, %arg0, %c0_i32_13 : i32
    %51 = arith.extui %50 : i1 to i32
    %c0_i32_14 = arith.constant 0 : i32
    %52 = arith.cmpi ne, %51, %c0_i32_14 : i32
    scf.if %52 {
      %cst_16 = arith.constant 0.000000e+00 : f32
      %56 = vector.shape_cast %44 : vector<8x1xi1> to vector<8x1xi1>
      %57 = vector.broadcast %56 : vector<8x1xi1> to vector<8x64xi1>
      %58 = vector.broadcast %cst_16 : f32 to vector<8x64xf32>
      %59 = arith.select %57, %38, %58 : vector<8x64xi1>, vector<8x64xf32>
      %c0_17 = arith.constant 0 : index
      %c0_18 = arith.constant 0 : index
      %60 = vector.load %arg7[%c0_17, %c0_18] : memref<1x64xf32, #tpu.memory_space<vmem>>, vector<1x64xf32>
      %cst_19 = arith.constant dense<0.000000e+00> : vector<64xf32>
      %61 = vector.multi_reduction <add>, %59, %cst_19 [0] : vector<8x64xf32> to vector<64xf32>
      %62 = vector.shape_cast %61 : vector<64xf32> to vector<1x64xf32>
      %63 = arith.addf %60, %62 : vector<1x64xf32>
      %c0_20 = arith.constant 0 : index
      %c0_21 = arith.constant 0 : index
      %64 = vector.load %arg7[%c0_20, %c0_21] : memref<1x64xf32, #tpu.memory_space<vmem>>, vector<1x64xf32>
      tpu.vector_store %arg7[%c0_20, %c0_21], %63 {strides = array<i32>} : memref<1x64xf32, #tpu.memory_space<vmem>>, vector<1x64xf32>,
      %c0_22 = arith.constant 0 : index
      %c0_23 = arith.constant 0 : index
      %65 = vector.load %arg8[%c0_22, %c0_23] : memref<1x64xf32, #tpu.memory_space<vmem>>, vector<1x64xf32>
      %66 = arith.mulf %59, %59 : vector<8x64xf32>
      %cst_24 = arith.constant dense<0.000000e+00> : vector<64xf32>
      %67 = vector.multi_reduction <add>, %66, %cst_24 [0] : vector<8x64xf32> to vector<64xf32>
      %68 = vector.shape_cast %67 : vector<64xf32> to vector<1x64xf32>
      %69 = arith.addf %65, %68 : vector<1x64xf32>
      %c0_25 = arith.constant 0 : index
      %c0_26 = arith.constant 0 : index
      %70 = vector.load %arg8[%c0_25, %c0_26] : memref<1x64xf32, #tpu.memory_space<vmem>>, vector<1x64xf32>
      tpu.vector_store %arg8[%c0_25, %c0_26], %69 {strides = array<i32>} : memref<1x64xf32, #tpu.memory_space<vmem>>, vector<1x64xf32>,
      %cst_27 = arith.constant 0.000000e+00 : f32
      %71 = vector.broadcast %cst_27 : f32 to vector<8x1xf32>
      %c0_28 = arith.constant 0 : index
      %c0_29 = arith.constant 0 : index
      %72 = vector.load %arg6[%c0_28, %c0_29] : memref<8x1xf32, #tpu.memory_space<vmem>>, vector<8x1xf32>
      tpu.vector_store %arg6[%c0_28, %c0_29], %71 {strides = array<i32>} : memref<8x1xf32, #tpu.memory_space<vmem>>, vector<8x1xf32>,
    } else {
    }
    %c1_i32 = arith.constant 1 : i32
    %53 = arith.cmpi eq, %arg0, %c1_i32 : i32
    %54 = arith.extui %53 : i1 to i32
    %c0_i32_15 = arith.constant 0 : i32
    %55 = arith.cmpi ne, %54, %c0_i32_15 : i32
    scf.if %55 {
      %56 = arith.sitofp %1 : i32 to f32
      %cst_16 = arith.constant 1.000000e+00 : f32
      %57 = arith.divf %cst_16, %56 : f32
      %c0_17 = arith.constant 0 : index
      %c0_18 = arith.constant 0 : index
      %58 = vector.load %arg7[%c0_17, %c0_18] : memref<1x64xf32, #tpu.memory_space<vmem>>, vector<1x64xf32>
      %59 = vector.broadcast %57 : f32 to vector<1x64xf32>
      %60 = arith.mulf %58, %59 : vector<1x64xf32>
      %c0_19 = arith.constant 0 : index
      %c0_20 = arith.constant 0 : index
      %61 = vector.load %arg8[%c0_19, %c0_20] : memref<1x64xf32, #tpu.memory_space<vmem>>, vector<1x64xf32>
      %62 = vector.broadcast %57 : f32 to vector<1x64xf32>
      %63 = arith.mulf %61, %62 : vector<1x64xf32>
      %64 = arith.mulf %60, %60 : vector<1x64xf32>
      %65 = arith.subf %63, %64 : vector<1x64xf32>
      %c1_21 = arith.constant 1 : index
      %c0_22 = arith.constant 0 : index
      %66 = vector.load %arg5[%c1_21, %c0_22] : memref<8x64xf32, #tpu.memory_space<vmem>>, vector<1x64xf32>
      %c2 = arith.constant 2 : index
      %c0_23 = arith.constant 0 : index
      %67 = vector.load %arg5[%c2, %c0_23] : memref<8x64xf32, #tpu.memory_space<vmem>>, vector<1x64xf32>
      %c3 = arith.constant 3 : index
      %c0_24 = arith.constant 0 : index
      %68 = vector.load %arg5[%c3, %c0_24] : memref<8x64xf32, #tpu.memory_space<vmem>>, vector<1x64xf32>
      %c4 = arith.constant 4 : index
      %c0_25 = arith.constant 0 : index
      %69 = vector.load %arg5[%c4, %c0_25] : memref<8x64xf32, #tpu.memory_space<vmem>>, vector<1x1xf32>
      %cst_26 = arith.constant 9.99999974E-6 : f32
      %70 = vector.broadcast %cst_26 : f32 to vector<1x64xf32>
      %71 = arith.addf %65, %70 : vector<1x64xf32>
      %72 = math.rsqrt %71 : vector<1x64xf32>
      %73 = arith.mulf %66, %72 : vector<1x64xf32>
      %74 = arith.mulf %68, %73 : vector<1x64xf32>
      %75 = arith.mulf %60, %73 : vector<1x64xf32>
      %76 = arith.subf %67, %75 : vector<1x64xf32>
      %77 = arith.mulf %76, %68 : vector<1x64xf32>
      %cst_27 = arith.constant dense<0.000000e+00> : vector<1xf32>
      %78 = vector.multi_reduction <add>, %77, %cst_27 [1] : vector<1x64xf32> to vector<1xf32>
      %79 = vector.shape_cast %78 : vector<1xf32> to vector<1x1xf32>
      %80 = arith.addf %79, %69 : vector<1x1xf32>
      %81 = vector.broadcast %74 : vector<1x64xf32> to vector<8x64xf32>
      %82 = arith.mulf %38, %81 : vector<8x64xf32>
      %cst_28 = arith.constant dense<0.000000e+00> : vector<8xf32>
      %83 = vector.multi_reduction <add>, %82, %cst_28 [1] : vector<8x64xf32> to vector<8xf32>
      %84 = vector.shape_cast %83 : vector<8xf32> to vector<8x1xf32>
      %85 = vector.broadcast %80 : vector<1x1xf32> to vector<8x1xf32>
      %86 = arith.addf %84, %85 : vector<8x1xf32>
      %c0_29 = arith.constant 0 : index
      %c0_30 = arith.constant 0 : index
      %87 = vector.load %arg6[%c0_29, %c0_30] : memref<8x1xf32, #tpu.memory_space<vmem>>, vector<8x1xf32>
      tpu.vector_store %arg6[%c0_29, %c0_30], %86 {strides = array<i32>} : memref<8x1xf32, #tpu.memory_space<vmem>>, vector<8x1xf32>,
    } else {
    }
    return
  }
  func.func @transform_0(%arg0: i32, %arg1: i32) -> i32 {
    %c0_i32 = arith.constant 0 : i32
    %c0_i32_0 = arith.constant 0 : i32
    return %c0_i32 : i32
  }
  func.func @transform_1(%arg0: i32, %arg1: i32) -> (i32, i32) {
    %c0_i32 = arith.constant 0 : i32
    %c0_i32_0 = arith.constant 0 : i32
    return %arg1, %c0_i32 : i32, i32
  }
  func.func @transform_2(%arg0: i32, %arg1: i32) -> (i32, i32) {
    %c0_i32 = arith.constant 0 : i32
    %c0_i32_0 = arith.constant 0 : i32
    %c0_i32_1 = arith.constant 0 : i32
    return %c0_i32, %c0_i32_0 : i32, i32
  }
  func.func @transform_3(%arg0: i32, %arg1: i32) -> (i32, i32) {
    %c0_i32 = arith.constant 0 : i32
    %c0_i32_0 = arith.constant 0 : i32
    %c0_i32_1 = arith.constant 0 : i32
    return %c0_i32, %c0_i32_0 : i32, i32
  }
  func.func @transform_4(%arg0: i32, %arg1: i32) -> (i32, i32) {
    %c0_i32 = arith.constant 0 : i32
    %c0_i32_0 = arith.constant 0 : i32
    return %arg1, %c0_i32 : i32, i32
  }
}

</mosaic_0001>

<bundles_post_ra>
// kernel: tpu_custom_call.1
= control target key start
LH: loop header
LB: loop body
LE: loop exit
PB: predicated region body
PF: predicated region fallthrough
CT: control target
= control target key end

     0   :  { %9 = vsyncpa [#allocation6], 0  ;;  %s889_s0 = inlined_call_operand.hbm [shape: s32[2], index: 0, kind: input, shape index: {}]   ;;  %s890_s1 = inlined_call_operand.hbm [shape: f32[8,64], index: 1, kind: input, shape index: {}]   ;;  %s891_s2 = inlined_call_operand.hbm [shape: f32[64,64], index: 2, kind: input, shape index: {}]   ;;  %s892_s3 = inlined_call_operand.hbm [shape: f32[8,64], index: 3, kind: input, shape index: {}]   ;;  %s893_s4 = inlined_call_operand.vmem [shape: f32[8,1], index: 4, kind: output, shape index: {}]  }
   0x1   :  { %10 = vsyncpa [#allocation5], 0 }
   0x2   :  { %11 = vsyncpa [#allocation9], 0  ;;  %s780_s15 = smov 0   ;;  %s782_s16 = smov 0  }
   0x3   :  { %s784_s17 = smov 0  }
   0x4 LB: > { %s184_s20 = sshll.u32 %s891_s2, 4  ;;  %s510_s21 = sadd.s32 4294967295, %s745_s17   ;;  %s745_s17 = sphi %s784_s17, %s17_s17   ;;  %s741_s16 = sphi %s782_s16, %s900_s16   ;;  %s737_s15 = sphi %s780_s15, %s899_s15   ;;  %s185_s20 = int_to_ptr.hbm [resolvable:$true] %s184_s20 }
   0x5   : > { %p511_p0 = scmp.ge.s32.totalorder %s745_s17, 1  ;;  %p149_p1 = scmp.lt.s32.totalorder %s745_s17, 3 }
   0x6   : > { %p801_p2 = scmp.eq.s32.totalorder %s510_s21, 0  ;;  %s747_s24 = smov [#allocation8]  }
   0x7   : > { %p805_p3 = pnand %p511_p0, %p149_p1  ;;  %s186_s25 = sshll.u32 %s747_s24, 4  ;;  %s187_s25 = int_to_ptr.vmem [resolvable:$true] %s186_s25 }
   0x8   : > { %s29_s27 = sadd.s32 1, %s741_s16  ;;  %s748_s28 = smov 128  }
   0x9   : > { %p548_p4 = pneg %p805_p3  ;;  %p31_p6 = scmp.ge.s32.totalorder %s29_s27, 2 }
   0xa   : > { %s749_s29 = smov 8   ;;  %s161_s6 = sshll.u32 %s889_s0, 4  ;;  %s162_s6 = int_to_ptr.hbm [resolvable:$true] %s161_s6 }
   0xb   : > { %p813_p5 = pnand %p801_p2, %p548_p4  ;;  %s902_s27 = smov (%p31_p6, %s29_s27), 0 }
   0xc   : > { %s173_s9 = sshll.u32 %s890_s1, 4  ;;  %s750_s10 = smov [#allocation4]   ;;  %s174_s9 = int_to_ptr.hbm [resolvable:$true] %s173_s9 }
   0xd   : > { %557 = dma.hbm_to_vmem [thread:$0]  (!%p813_p5), %s185_s20, 1024, %s187_s25, [#allocation9], %s748_s28, %s748_s28, %s749_s29  }
   0xe   : > { %551 = dma.hbm_to_smem (!%p813_p5), %s162_s6, 16, %s750_s10, [#allocation6]  }
   0xf   : > { %s751_s11 = smov [#allocation7]   ;;  %s199_s18 = sshll.u32 %s892_s3, 4  ;;  %s200_s18 = int_to_ptr.hbm [resolvable:$true] %s199_s18 }
  0x10   : > { %s175_s12 = sshll.u32 %s751_s11, 4  ;;  %s752_s19 = smov [#allocation10]   ;;  %s176_s12 = int_to_ptr.vmem [resolvable:$true] %s175_s12 }
  0x11   : > { %554 = dma.hbm_to_vmem [thread:$0]  (!%p813_p5), %s174_s9, 128, %s176_s12, [#allocation5]  }
  0x12   : > { %s201_s20 = sshll.u32 %s752_s19, 4  ;;  %214 = sbr.rel (%p805_p3) target bundleno = 443 (0x1bb), region = 36  ;;  %s202_s20 = int_to_ptr.vmem [resolvable:$true] %s201_s20 }
  0x13   : > { %560 = dma.hbm_to_vmem [thread:$0]  (!%p813_p5), %s200_s18, 128, %s202_s20, [#allocation9]  }
  0x17   : > { %724 = dma.done.wait (%p801_p2), [#allocation6], 16  }
  0x18   : > { %726 = vsyncadd (%p801_p2), [#allocation6], 4294967280 }
  0x19   : > { %728 = dma.done.wait (%p801_p2), [#allocation5], 128  }
  0x1a   : > { %730 = vsyncadd (%p801_p2), [#allocation5], 4294967168 }
  0x1b   : > { %732 = dma.done.wait (%p801_p2), [#allocation9], 1152  }
  0x1c   : > { %734 = vsyncadd (%p801_p2), [#allocation9], 4294966144 }
  0x1d   : > { %236 = sfence }
  0x1e   : > { %v265_v0 = vld [vmem:[#allocation8 + $0x38] sm:$0xff]  ;;  %v264_v1 = vld [vmem:[#allocation8 + $0x30] sm:$0xff]  ;;  %v263_v2 = vld [vmem:[#allocation8 + $0x28] sm:$0xff]  ;;  %vm268_vm0 = vcmask 523264   ;;  %p317_p7 = scmp.eq.s32.totalorder %s737_s15, 0  ;;  %v293_v9 = vlaneseq  ;;  %s255_s21 = sld [smem:[#allocation4]] }
  0x1f   : > { %280 = vmatpush.msra.mxu0 %v265_v0  ;;  %v262_v3 = vld [vmem:[#allocation8 + $0x20] sm:$0xff]  ;;  %v261_v4 = vld [vmem:[#allocation8 + $0x18] sm:$0xff]  ;;  %v260_v5 = vld [vmem:[#allocation8 + $0x10] sm:$0xff]  ;;  %s853_s23 = sld [smem:[#allocation4 + $0x1]]  ;;  %vm323_vm3 = vcmask (%p317_p7), 516096   ;;  %v753_v31 = vmov (%p317_p7), 0.0  }
  0x20   : > { %v259_v6 = vld [vmem:[#allocation8 + $0x8] sm:$0xff]  ;;  %v258_v7 = vld [vmem:[#allocation8] sm:$0xff]  ;;  %v257_v8 = vld [vmem:[#allocation7] sm:$0xff]  ;;  %v294_v10 = vshrl.u32 %v293_v9, 7  ;;  %v296_v11 = vand.u32 127, %v293_v9 }
  0x21   : > { %281 = vmatpush.msra.mxu0 %v264_v1  ;;  %v601_v24 = vld [vmem:[#allocation10] ss:$0 sm:$0xff]  ;;  %324 = vst.msk [vmem:[#allocation2] sm:$0x1] (%p317_p7), %vm323_vm3, %v753_v31 }
  0x22   : > { %v300_v12 = vmul.u32 64, %v294_v10  ;;  %325 = vst.msk [vmem:[#allocation3] sm:$0x1] (%p317_p7), %vm323_vm3, %v753_v31 }
  0x23   : > { %282 = vmatpush.msra.mxu0 %v263_v2 }
  0x24   : > { %s302_s22 = smul.u32 2654435769, %s255_s21  ;;  %v301_v13 = vadd.s32 %v300_v12, %v296_v11 }
  0x25   : > { %283 = vmatpush.msra.mxu0 %v262_v3  ;;  %v315_v16 = vstv %s853_s23 }
  0x26   : > { %v303_v14 = vstv %s302_s22  ;;  %vm856_vm1 = vcmp.lt.s32.totalorder %v294_v10, %v315_v16 }
  0x27   : > { %284 = vmatpush.msra.mxu0 %v261_v4  ;;  %v304_v15 = vxor.u32 %v303_v14, %v301_v13 }
  0x29   : > { %285 = vmatpush.msra.mxu0 %v260_v5  ;;  %v305_v18 = vmul.u32 2246822507, %v304_v15 }
  0x2b   : > { %286 = vmatpush.msra.mxu0 %v259_v6  ;;  %v306_v19 = vshrl.u32 %v305_v18, 13 }
  0x2d   : > { %287 = vmatpush.msra.mxu0 %v258_v7  ;;  %v307_v20 = vxor.u32 %v306_v19, %v305_v18 }
  0x2e   : > { %522 = vmatmul.msk.f32.vlgmr.msra.gmra.mxu0 %vm268_vm0, %v257_v8 }
  0x2f   : > { %v308_v21 = vmul.u32 3266489909, %v307_v20 }
  0x31   : > { %v309_v22 = vshrl.u32 %v308_v21, 16 }
  0x33   : > { %v310_v23 = vxor.u32 %v309_v22, %v308_v21 }
  0x35   : > { %v311_v26 = vshrl.u32 %v310_v23, 31 }
  0x37   : > { %vm312_vm2 = vcmp.eq.s32.totalorder %v311_v26, 0 }
  0xab   : > { %v289_v25 = vpop.f32.mrf.mxu0 }
  0xac   : > { %v290_v27 = vadd.f32 %v601_v24, %v289_v25 }
  0xae   : > { %v292_v28 = vmax.f32 %v290_v27, 0.0  ;;  %322 = sbr.rel (!%p317_p7) target bundleno = 179 (0xb3), region = 56 }
  0xb0   : > { %v313_v29 = vmul.f32 2.0, %v292_v28 }
  0xb2   : > { %v860_v30 = vsel %vm312_vm2, %v313_v29, 0.0 }
  0xb3 PF: > { %p524_p8 = scmp.ne.s32.totalorder %s737_s15, 0 }
  0xb5   : > { %328 = sbr.rel (%p524_p8) target bundleno = 205 (0xcd), region = 60 }
  0xba   : > { %v331_v32 = vsel %vm856_vm1, %v860_v30, 0.0  ;;  %vm354_vm4 = vcmask 7168   ;;  %v754_v36 = vmov 0.0   ;;  %v332_v46 = vld [vmem:[#allocation2] sm:$0x1]  ;;  %vm341_vm5 = vcmask 516096  }
  0xbb   : > { %v333_v33 = vsel %vm268_vm0, %v331_v32, 0.0  ;;  %v344_v34 = vmul.f32 %v331_v32, %v331_v32  ;;  %355 = vst.msk [vmem:[%s893_s4] sm:$0xff] %vm354_vm4, %v754_v36  ;;  %v343_v49 = vld [vmem:[#allocation3] sm:$0x1] }
  0xbc   : > { %v334_v35 = vrot.slane %v333_v33, 4 }
  0xbd   : > { %v345_v37 = vsel %vm268_vm0, %v344_v34, 0.0 }
  0xbe   : > { %v335_v38 = vadd.f32 %v334_v35, %v333_v33  ;;  %v346_v39 = vrot.slane %v345_v37, 4 }
  0xc0   : > { %v336_v40 = vrot.slane %v335_v38, 2  ;;  %v347_v41 = vadd.f32 %v346_v39, %v345_v37 }
  0xc2   : > { %v337_v42 = vadd.f32 %v336_v40, %v335_v38  ;;  %v348_v43 = vrot.slane %v347_v41, 2 }
  0xc4   : > { %v338_v44 = vrot.slane %v337_v42, 1  ;;  %v349_v45 = vadd.f32 %v348_v43, %v347_v41 }
  0xc6   : > { %v339_v47 = vadd.f32 %v338_v44, %v337_v42  ;;  %v350_v48 = vrot.slane %v349_v45, 1 }
  0xc8   : > { %v340_v50 = vadd.f32 %v339_v47, %v332_v46  ;;  %v351_v51 = vadd.f32 %v350_v48, %v349_v45 }
  0xca   : > { %342 = vst.msk [vmem:[#allocation2] sm:$0x1] %vm341_vm5, %v340_v50  ;;  %v352_v52 = vadd.f32 %v351_v51, %v343_v49 }
  0xcc   : > { %353 = vst.msk [vmem:[#allocation3] sm:$0x1] %vm341_vm5, %v352_v52 }
  0xcd PF: > { %p525_p9 = scmp.ne.s32.totalorder %s737_s15, 1 }
  0xce   : > { %s360_s26 = scvt.s32.f32 (!%p525_p9), %s853_s23 }
  0xcf   : > { %359 = sbr.rel (%p525_p9) target bundleno = 443 (0x1bb), region = 64 }
  0xd4   : > { %v361_v53 = vstv %s360_s26  ;;  %v377_v0 = vld [vmem:[#allocation2] sm:$0x1]  ;;  %v380_v2 = vld [vmem:[#allocation3] sm:$0x1]  ;;  %v384_v13 = vld [vmem:[#allocation10 + $0x1] sm:$0x1] }
  0xd5   : > { %602 = vrcp.f32 %v361_v53  ;;  %v373_v56 = vand.u32 2147483648, %v361_v53  ;;  %vm367_vm6 = vweird.f32 %v361_v53  ;;  %v371_v58 = vand.u32 2147483647, %v361_v53  ;;  %v385_v17 = vld [vmem:[#allocation10 + $0x2] sm:$0x1] }
  0xd6   : > { %v386_v18 = vld [vmem:[#allocation10 + $0x3] sm:$0x1]  ;;  %vm404_vm13 = vcmask 516096   ;;  %v387_v27 = vld [vmem:[#allocation10 + $0x4] sm:$0x1]  ;;  %vm416_vm14 = vcmask 7168  }
  0xd7   : > { %v374_v60 = vor.u32 1.1754944e-38, %v373_v56  ;;  %vm372_vm9 = vcmp.eq.f32.partialorder %v371_v58, 8.507059e+37 }
  0xdb   : > { %v603_v54 = vpop.eup %602 }
  0xdc   : > { %v363_v55 = vmul.f32 %v603_v54, %v361_v53  ;;  %vm368_vm7 = vweird.f32 %v603_v54 }
  0xdd   : > { %vm369_vm8 = vmor %vm367_vm6, %vm368_vm7 }
  0xde   : > { %v364_v57 = vsub.f32 1.0, %v363_v55 }
  0xe0   : > { %v365_v59 = vmul.f32 %v603_v54, %v364_v57 }
  0xe2   : > { %v366_v61 = vadd.f32 %v603_v54, %v365_v59 }
  0xe4   : > { %v370_v62 = vsel %vm369_vm8, %v603_v54, %v366_v61 }
  0xe5   : > { %v375_v63 = vsel %vm372_vm9, %v374_v60, %v370_v62 }
  0xe6   : > { %530 = vpush %v375_v63 }
 0x117   : > { %s531_s15 = spop %530 }
 0x118   : > { %v378_v1 = vstv %s531_s15 }
 0x119   : > { %v379_v3 = vmul.f32 %v378_v1, %v377_v0  ;;  %v381_v4 = vmul.f32 %v380_v2, %v378_v1 }
 0x11b   : > { %v382_v5 = vmul.f32 %v379_v3, %v379_v3 }
 0x11d   : > { %v383_v6 = vsub.f32 %v381_v4, %v382_v5 }
 0x11f   : > { %v388_v7 = vadd.f32 1e-05, %v383_v6 }
 0x121   : > { %604 = vrsqrt.f32 %v388_v7  ;;  %vm395_vm11 = vweird.f32 %v388_v7 }
 0x127   : > { %v605_v8 = vpop.eup %604 }
 0x128   : > { %v390_v9 = vmul.f32 %v605_v8, %v388_v7  ;;  %vm396_vm10 = vweird.f32 %v605_v8 }
 0x129   : > { %vm397_vm12 = vmor %vm395_vm11, %vm396_vm10 }
 0x12a   : > { %v391_v10 = vmul.f32 %v605_v8, %v390_v9 }
 0x12c   : > { %v392_v11 = vmul.f32 0.5, %v391_v10 }
 0x12e   : > { %v393_v12 = vsub.f32 1.5, %v392_v11 }
 0x130   : > { %v394_v14 = vmul.f32 %v605_v8, %v393_v12 }
 0x132   : > { %v398_v15 = vsel %vm397_vm12, %v605_v8, %v394_v14 }
 0x133   : > { %v399_v16 = vmul.f32 %v398_v15, %v384_v13 }
 0x135   : > { %v401_v19 = vmul.f32 %v399_v16, %v379_v3  ;;  %v400_v21 = vmul.f32 %v399_v16, %v386_v18 }
 0x137   : > { %v402_v20 = vsub.f32 %v385_v17, %v401_v19  ;;  %v409_v24 = vperm.slane %v400_v21, 0 }
 0x139   : > { %v403_v22 = vmul.f32 %v402_v20, %v386_v18  ;;  %v410_v25 = vmul.f32 %v409_v24, %v860_v30 }
 0x13b   : > { %v405_v23 = vsel %vm404_vm13, %v403_v22, 0.0  ;;  %v411_v26 = vsel %vm268_vm0, %v410_v25, 0.0 }
 0x13c   : > { %406 = vadd.xlane.f32.xlu0 %v405_v23 }
 0x144   : > { %412 = vadd.xlane.f32.xlu0 %v411_v26 }
 0x1af   : > { %v407_v28 = vpop.xlane.xlu0 %406 }
 0x1b0   : > { %v408_v29 = vadd.f32 %v407_v28, %v387_v27 }
 0x1b2   : > { %v414_v31 = vperm.slane %v408_v29, 0 }
 0x1b7   : > { %v413_v32 = vpop.xlane.xlu0 %412 }
 0x1b8   : > { %v415_v33 = vadd.f32 %v414_v31, %v413_v32 }
 0x1ba   : > { %417 = vst.msk [vmem:[%s893_s4] sm:$0xff] %vm416_vm14, %v415_v33 }
 0x1bb PF: > { %s17_s17 = sadd.s32 1, %s745_s17   ;;  %s899_s15 = smov %s741_s16 }
 0x1bc   : > { %p14_p10 = scmp.ge.s32.totalorder %s17_s17, 4   ;;  %s900_s16 = smov %s902_s27 }
 0x1be   :  { %16 = sbr.rel (!%p14_p10) target bundleno = 4 (0x4), region = 94 }
 0x1c3   :  { %437 = vsyncpa [#allocation5], 1 }
 0x1c4   :  { %439 = vsyncpa [#allocation5 + $0x1], 1 }
 0x1c5   :  { %440 = vsyncpa [#allocation9], 1 }
 0x1c6   :  { %441 = vsyncpa [#allocation6], 1 }
 0x1c7   :  { %443 = vsyncpa [#allocation6 + $0x1], 1 }

</bundles_post_ra>
